<compile_context>
chip_gen: v6e
topology: v6e:2x2x1
jax: 0.10.0
libtpu: 0.0.40
codegen_flags: <defaults>
</compile_context>

<pallas_src>
import functools

import jax
import jax.numpy as jnp
from jax.experimental import pallas as pl
from jax.experimental.pallas import tpu as pltpu


def _round_up(x: int, m: int) -> int:
    return ((x + m - 1) // m) * m


def mf_matmul_kernel(a_ref, b_ref, o_ref, acc_ref):
    """One (tm, tn) output tile; accumulate over the K grid axis in f32."""
    @pl.when(pl.program_id(2) == 0)
    def _():
        acc_ref[...] = jnp.zeros_like(acc_ref)

    # Canonical (tm, tk) x (tk, tn) matmul on the MXU, f32 accumulation.
    acc_ref[...] += jnp.dot(
        a_ref[...], b_ref[...], preferred_element_type=jnp.float32
    )

    @pl.when(pl.program_id(2) == pl.num_programs(2) - 1)
    def _():
        o_ref[...] = acc_ref[...].astype(o_ref.dtype)


@functools.partial(jax.jit, static_argnames=("tm", "tn", "tk"))
def mf_forward(P, Q, *, tm: int = 256, tn: int = 256, tk: int = 512):
    """Compute P.T @ Q (MF.forward) with a tiled Pallas matmul kernel."""
    K, M = P.shape
    K2, N = Q.shape
    assert K == K2, "P and Q must share the latent dimension K"

    # Tiny problems: the whole matmul is a few kFLOPs; the pallas_call custom
    # call boundary alone dwarfs it. Let XLA's fused dot handle it.
    if M * N < 128 * 128:
        return jnp.dot(P.T, Q, preferred_element_type=jnp.float32)

    # Layout plumbing in the wrapper: present (M, K) x (K, N) to the MXU.
    A = P.T  # (M, K)

    # Clamp tiles to the (128-rounded) problem size, then pad the operands so
    # every tile is full. All resulting dims are multiples of 128 -> the
    # output store is lane-dense and every MXU pass is full width.
    tm = min(tm, _round_up(M, 128))
    tn = min(tn, _round_up(N, 128))
    tk = min(tk, _round_up(K, 128))
    Mp = _round_up(M, tm)
    Np = _round_up(N, tn)
    Kp = _round_up(K, tk)

    if (Mp, Kp) != (M, K):
        A = jnp.pad(A, ((0, Mp - M), (0, Kp - K)))
    B = Q
    if (Kp, Np) != (K, N):
        B = jnp.pad(B, ((0, Kp - K), (0, Np - N)))

    out_padded = pl.pallas_call(
        mf_matmul_kernel,
        out_shape=jax.ShapeDtypeStruct((Mp, Np), jnp.float32),
        grid=(Mp // tm, Np // tn, Kp // tk),
        in_specs=[
            pl.BlockSpec((tm, tk), lambda i, j, k: (i, k)),
            pl.BlockSpec((tk, tn), lambda i, j, k: (k, j)),
        ],
        out_specs=pl.BlockSpec((tm, tn), lambda i, j, k: (i, j)),
        scratch_shapes=[pltpu.VMEM((tm, tn), jnp.float32)],
        compiler_params=pltpu.CompilerParams(
            # M/N independent (megacore shardable on v7x), K is the reduction.
            dimension_semantics=("parallel", "parallel", "arbitrary"),
            vmem_limit_bytes=32 * 1024 * 1024,
        ),
    )(A, B)

    # Slice the zero-padding back off.
    if (Mp, Np) != (M, N):
        out_padded = out_padded[:M, :N]
    return out_padded


if __name__ == "__main__":
    # MF(input_size=(M, N), K) — sizes large enough to exercise the tiled
    # Pallas path (multiple N tiles, padded K) while staying small.
    M, N, K = 256, 384, 96
    key = jax.random.PRNGKey(0)
    kp, kq = jax.random.split(key)

    # Deterministic parameter init matching torch.Tensor(...).uniform_(0, 1).
    P = jax.random.uniform(kp, (K, M), dtype=jnp.float32, minval=0.0, maxval=1.0)
    Q = jax.random.uniform(kq, (K, N), dtype=jnp.float32, minval=0.0, maxval=1.0)

    out = jax.block_until_ready(mf_forward(P, Q))
    ref = P.T @ Q
    assert out.shape == (M, N)
    assert jnp.allclose(out, ref, atol=1e-4, rtol=1e-5), "mismatch vs reference"

    # Tiny-shape path (original toy sizes) dispatches to jnp.dot by design.
    Ms, Ns, Ks = 16, 32, 8
    Ps = jax.random.uniform(kp, (Ks, Ms), dtype=jnp.float32)
    Qs = jax.random.uniform(kq, (Ks, Ns), dtype=jnp.float32)
    out_s = jax.block_until_ready(mf_forward(Ps, Qs))
    assert jnp.allclose(out_s, Ps.T @ Qs, atol=1e-5, rtol=1e-5)

    print("KERNEL_OK")
</pallas_src>

<mosaic_0001>
module attributes {stable_mosaic.version = 11 : i64} {
  func.func @mf_matmul_kernel(%arg0: i32, %arg1: i32, %arg2: i32, %arg3: memref<256x128xf32, #tpu.memory_space<vmem>>, %arg4: memref<128x256xf32, #tpu.memory_space<vmem>>, %arg5: memref<256x256xf32, #tpu.memory_space<vmem>>, %arg6: memref<256x256xf32, #tpu.memory_space<vmem>>) attributes {dimension_semantics = [#tpu.dimension_semantics<parallel>, #tpu.dimension_semantics<parallel>, #tpu.dimension_semantics<arbitrary>], iteration_bounds = array<i64: 1, 2, 1>, scalar_prefetch = 0 : i64, scratch_operands = 1 : i64, tpu.core_type = #tpu.core_type<tc>, window_params = [{transform_indices = @transform_0, window_bounds = array<i64: 256, 128>}, {transform_indices = @transform_1, window_bounds = array<i64: 128, 256>}, {transform_indices = @transform_2, window_bounds = array<i64: 256, 256>}]} {
    %c0_i32 = arith.constant 0 : i32
    %0 = arith.cmpi eq, %arg2, %c0_i32 : i32
    %1 = arith.extui %0 : i1 to i32
    %c0_i32_0 = arith.constant 0 : i32
    %2 = arith.cmpi ne, %1, %c0_i32_0 : i32
    scf.if %2 {
      %cst_10 = arith.constant 0.000000e+00 : f32
      %12 = vector.broadcast %cst_10 : f32 to vector<256x256xf32>
      %c0_11 = arith.constant 0 : index
      %c0_12 = arith.constant 0 : index
      %13 = vector.load %arg6[%c0_11, %c0_12] : memref<256x256xf32, #tpu.memory_space<vmem>>, vector<256x256xf32>
      tpu.vector_store %arg6[%c0_11, %c0_12], %12 {strides = array<i32>} : memref<256x256xf32, #tpu.memory_space<vmem>>, vector<256x256xf32>,
    } else {
    }
    %c0 = arith.constant 0 : index
    %c0_1 = arith.constant 0 : index
    %3 = vector.load %arg6[%c0, %c0_1] : memref<256x256xf32, #tpu.memory_space<vmem>>, vector<256x256xf32>
    %c0_2 = arith.constant 0 : index
    %c0_3 = arith.constant 0 : index
    %4 = vector.load %arg3[%c0_2, %c0_3] : memref<256x128xf32, #tpu.memory_space<vmem>>, vector<256x128xf32>
    %c0_4 = arith.constant 0 : index
    %c0_5 = arith.constant 0 : index
    %5 = vector.load %arg4[%c0_4, %c0_5] : memref<128x256xf32, #tpu.memory_space<vmem>>, vector<128x256xf32>
    %cst = arith.constant dense<0.000000e+00> : vector<256x256xf32>
    %6 = tpu.matmul %4, %5, %cst {dimension_numbers = #tpu.dot_dimension_numbers<[1], [0], [0], [1], [0, 0, 1, 1], [], []>} : vector<256x128xf32>, vector<128x256xf32>, vector<256x256xf32> -> vector<256x256xf32>
    %7 = arith.addf %3, %6 : vector<256x256xf32>
    %c0_6 = arith.constant 0 : index
    %c0_7 = arith.constant 0 : index
    %8 = vector.load %arg6[%c0_6, %c0_7] : memref<256x256xf32, #tpu.memory_space<vmem>>, vector<256x256xf32>
    tpu.vector_store %arg6[%c0_6, %c0_7], %7 {strides = array<i32>} : memref<256x256xf32, #tpu.memory_space<vmem>>, vector<256x256xf32>,
    %c0_i32_8 = arith.constant 0 : i32
    %9 = arith.cmpi eq, %arg2, %c0_i32_8 : i32
    %10 = arith.extui %9 : i1 to i32
    %c0_i32_9 = arith.constant 0 : i32
    %11 = arith.cmpi ne, %10, %c0_i32_9 : i32
    scf.if %11 {
      %c0_10 = arith.constant 0 : index
      %c0_11 = arith.constant 0 : index
      %12 = vector.load %arg6[%c0_10, %c0_11] : memref<256x256xf32, #tpu.memory_space<vmem>>, vector<256x256xf32>
      %c0_12 = arith.constant 0 : index
      %c0_13 = arith.constant 0 : index
      %13 = vector.load %arg5[%c0_12, %c0_13] : memref<256x256xf32, #tpu.memory_space<vmem>>, vector<256x256xf32>
      tpu.vector_store %arg5[%c0_12, %c0_13], %12 {strides = array<i32>} : memref<256x256xf32, #tpu.memory_space<vmem>>, vector<256x256xf32>,
    } else {
    }
    return
  }
  func.func @transform_0(%arg0: i32, %arg1: i32, %arg2: i32) -> (i32, i32) {
    %c0_i32 = arith.constant 0 : i32
    return %arg0, %arg2 : i32, i32
  }
  func.func @transform_1(%arg0: i32, %arg1: i32, %arg2: i32) -> (i32, i32) {
    %c0_i32 = arith.constant 0 : i32
    return %arg2, %arg1 : i32, i32
  }
  func.func @transform_2(%arg0: i32, %arg1: i32, %arg2: i32) -> (i32, i32) {
    %c0_i32 = arith.constant 0 : i32
    return %arg0, %arg1 : i32, i32
  }
}

</mosaic_0001>

<bundles_post_ra>
// kernel: mf_forward.1
= control target key start
LH: loop header
LB: loop body
LE: loop exit
PB: predicated region body
PF: predicated region fallthrough
CT: control target
= control target key end

     0   :  { %s1390_s9 = smov 0   ;;  %s1392_s10 = smov 0   ;;  %s1892_s0 = inlined_call_operand.vmem [shape: f32[256,128], index: 0, kind: input, shape index: {}]   ;;  %s1893_s1 = inlined_call_operand.vmem [shape: f32[128,512], index: 1, kind: input, shape index: {}]   ;;  %s1894_s2 = inlined_call_operand.vmem [shape: f32[256,512], index: 2, kind: output, shape index: {}]  }
   0x1   :  { %s1394_s11 = smov 0   ;;  %s1396_s12 = smov 0  }
   0x2   :  { %s1398_s13 = smov 0  }
   0x3 LB: > { %s27_s14 = sadd.s32 1, %s1368_s12  ;;  %s1243_s15 = sadd.s32 4294967295, %s1372_s13   ;;  %s1372_s13 = sphi %s1398_s13, %s12_s13   ;;  %s1368_s12 = sphi %s1396_s12, %s1899_s12   ;;  %s1364_s11 = sphi %s1394_s11, %s1898_s11   ;;  %s1360_s10 = sphi %s1392_s10, %s1897_s10   ;;  %s1356_s9 = sphi %s1390_s9, %s1896_s9  }
   0x4   : > { %p29_p0 = scmp.ge.s32.totalorder %s27_s14, 2  ;;  %p75_p1 = scmp.ne.s32.totalorder %s1360_s10, %s1356_s9 }
   0x5   : > { %p76_p2 = scmp.eq.s32.totalorder %s1372_s13, 0  ;;  %p107_p4 = scmp.eq.s32.totalorder %s1243_s15, 1 }
   0x6   : > { %s1901_s14 = smov (%p29_p0, %s27_s14), 0  ;;  %s68_s17 = sadd.s32 1, %s1360_s10 }
   0x7   : > { %p77_p3 = por %p76_p2, %p75_p1  ;;  %s64_s16 = ssub.s32 %s1368_s12, %s1901_s14 }
   0x8   : > { %p66_p5 = scmp.eq.s32.totalorder %s64_s16, 0  ;;  %p1425_p6 = por %p107_p4, %p75_p1 }
   0x9   : > { %p1247_p7 = scmp.ge.s32.totalorder %s1372_s13, 2 }
   0xa   : > { %s1430_s19 = scalar_select %p66_p5, %s1360_s10, %s68_s17  }
   0xb   : > { %141 = sbr.rel (%p1247_p7) target bundleno = 36 (0x24), region = 20 }
  0x10   : > { %144 = sbr.rel (!%p77_p3) target bundleno = 36 (0x24), region = 24  ;;  %s146_s20 = sand.u32 (%p77_p3), 1, %s1360_s10  }
  0x11   : > { %s1259_s21 = sshll.u32 (%p77_p3), %s1368_s12, 4  ;;  %s1248_s22 = sshll.u32 (%p77_p3), %s146_s20, 8 }
  0x12   : > { %s1438_s25 = scalar_lea.vmem (%p77_p3), %s1893_s1, %s1259_s21  ;;  %s1443_s26 = scalar_lea.vmem (%p77_p3), [#allocation3], %s1248_s22 }
  0x13   : > { %v167_v0 = vld [vmem:[%s1438_s25] sm:$0xff] (%p77_p3)  ;;  %v169_v1 = vld [vmem:[%s1438_s25 + $0x8] sm:$0xff] (%p77_p3) }
  0x14   : > { %v171_v2 = vld [vmem:[%s1438_s25 + $0x20] sm:$0xff] (%p77_p3)  ;;  %168 = vst [vmem:[%s1443_s26] sm:$0xff] (%p77_p3), %v167_v0  ;;  %170 = vst [vmem:[%s1443_s26 + $0x8] sm:$0xff] (%p77_p3), %v169_v1  ;;  %v173_v3 = vld [vmem:[%s1438_s25 + $0x28] sm:$0xff] (%p77_p3) }
  0x15   : > { %172 = vst [vmem:[%s1443_s26 + $0x10] sm:$0xff] %v171_v2  ;;  %v175_v4 = vld [vmem:[%s1438_s25 + $0x40] sm:$0xff]  ;;  %v177_v5 = vld [vmem:[%s1438_s25 + $0x48] sm:$0xff]  ;;  %174 = vst [vmem:[%s1443_s26 + $0x18] sm:$0xff] %v173_v3 }
  0x16   : > { %176 = vst [vmem:[%s1443_s26 + $0x20] sm:$0xff] %v175_v4  ;;  %178 = vst [vmem:[%s1443_s26 + $0x28] sm:$0xff] %v177_v5  ;;  %v179_v6 = vld [vmem:[%s1438_s25 + $0x60] sm:$0xff]  ;;  %v181_v7 = vld [vmem:[%s1438_s25 + $0x68] sm:$0xff] }
  0x17   : > { %v183_v8 = vld [vmem:[%s1438_s25 + $0x80] sm:$0xff]  ;;  %180 = vst [vmem:[%s1443_s26 + $0x30] sm:$0xff] %v179_v6  ;;  %182 = vst [vmem:[%s1443_s26 + $0x38] sm:$0xff] %v181_v7  ;;  %v185_v9 = vld [vmem:[%s1438_s25 + $0x88] sm:$0xff] }
  0x18   : > { %184 = vst [vmem:[%s1443_s26 + $0x40] sm:$0xff] %v183_v8  ;;  %v187_v10 = vld [vmem:[%s1438_s25 + $0xa0] sm:$0xff]  ;;  %v189_v11 = vld [vmem:[%s1438_s25 + $0xa8] sm:$0xff]  ;;  %186 = vst [vmem:[%s1443_s26 + $0x48] sm:$0xff] %v185_v9 }
  0x19   : > { %188 = vst [vmem:[%s1443_s26 + $0x50] sm:$0xff] %v187_v10  ;;  %190 = vst [vmem:[%s1443_s26 + $0x58] sm:$0xff] %v189_v11  ;;  %v191_v12 = vld [vmem:[%s1438_s25 + $0xc0] sm:$0xff]  ;;  %v193_v13 = vld [vmem:[%s1438_s25 + $0xc8] sm:$0xff] }
  0x1a   : > { %v195_v14 = vld [vmem:[%s1438_s25 + $0xe0] sm:$0xff]  ;;  %192 = vst [vmem:[%s1443_s26 + $0x60] sm:$0xff] %v191_v12  ;;  %194 = vst [vmem:[%s1443_s26 + $0x68] sm:$0xff] %v193_v13  ;;  %v197_v15 = vld [vmem:[%s1438_s25 + $0xe8] sm:$0xff] }
  0x1b   : > { %196 = vst [vmem:[%s1443_s26 + $0x70] sm:$0xff] %v195_v14  ;;  %v199_v16 = vld [vmem:[%s1438_s25 + $0x100] sm:$0xff]  ;;  %v201_v17 = vld [vmem:[%s1438_s25 + $0x108] sm:$0xff]  ;;  %198 = vst [vmem:[%s1443_s26 + $0x78] sm:$0xff] %v197_v15 }
  0x1c   : > { %200 = vst [vmem:[%s1443_s26 + $0x80] sm:$0xff] %v199_v16  ;;  %202 = vst [vmem:[%s1443_s26 + $0x88] sm:$0xff] %v201_v17  ;;  %v203_v18 = vld [vmem:[%s1438_s25 + $0x120] sm:$0xff]  ;;  %v205_v19 = vld [vmem:[%s1438_s25 + $0x128] sm:$0xff] }
  0x1d   : > { %v207_v20 = vld [vmem:[%s1438_s25 + $0x140] sm:$0xff]  ;;  %204 = vst [vmem:[%s1443_s26 + $0x90] sm:$0xff] %v203_v18  ;;  %206 = vst [vmem:[%s1443_s26 + $0x98] sm:$0xff] %v205_v19  ;;  %v209_v21 = vld [vmem:[%s1438_s25 + $0x148] sm:$0xff] }
  0x1e   : > { %208 = vst [vmem:[%s1443_s26 + $0xa0] sm:$0xff] %v207_v20  ;;  %v211_v22 = vld [vmem:[%s1438_s25 + $0x160] sm:$0xff]  ;;  %v213_v23 = vld [vmem:[%s1438_s25 + $0x168] sm:$0xff]  ;;  %210 = vst [vmem:[%s1443_s26 + $0xa8] sm:$0xff] %v209_v21 }
  0x1f   : > { %212 = vst [vmem:[%s1443_s26 + $0xb0] sm:$0xff] %v211_v22  ;;  %214 = vst [vmem:[%s1443_s26 + $0xb8] sm:$0xff] %v213_v23  ;;  %v215_v24 = vld [vmem:[%s1438_s25 + $0x180] sm:$0xff]  ;;  %v217_v25 = vld [vmem:[%s1438_s25 + $0x188] sm:$0xff] }
  0x20   : > { %v219_v26 = vld [vmem:[%s1438_s25 + $0x1a0] sm:$0xff]  ;;  %216 = vst [vmem:[%s1443_s26 + $0xc0] sm:$0xff] %v215_v24  ;;  %218 = vst [vmem:[%s1443_s26 + $0xc8] sm:$0xff] %v217_v25  ;;  %v221_v27 = vld [vmem:[%s1438_s25 + $0x1a8] sm:$0xff] }
  0x21   : > { %220 = vst [vmem:[%s1443_s26 + $0xd0] sm:$0xff] %v219_v26  ;;  %v223_v28 = vld [vmem:[%s1438_s25 + $0x1c0] sm:$0xff]  ;;  %v225_v29 = vld [vmem:[%s1438_s25 + $0x1c8] sm:$0xff]  ;;  %222 = vst [vmem:[%s1443_s26 + $0xd8] sm:$0xff] %v221_v27 }
  0x22   : > { %224 = vst [vmem:[%s1443_s26 + $0xe0] sm:$0xff] %v223_v28  ;;  %226 = vst [vmem:[%s1443_s26 + $0xe8] sm:$0xff] %v225_v29  ;;  %v227_v30 = vld [vmem:[%s1438_s25 + $0x1e0] sm:$0xff]  ;;  %v229_v31 = vld [vmem:[%s1438_s25 + $0x1e8] sm:$0xff] }
  0x23   : > { %228 = vst [vmem:[%s1443_s26 + $0xf0] sm:$0xff] %v227_v30  ;;  %230 = vst [vmem:[%s1443_s26 + $0xf8] sm:$0xff] %v229_v31 }
  0x24 PF: > { %p1251_p8 = scmp.ge.s32.totalorder %s1372_s13, 1  ;;  %p235_p9 = scmp.lt.s32.totalorder %s1372_s13, 3 }
  0x26   : > { %p236_p10 = pnand %p1251_p8, %p235_p9 }
  0x27   : > { %s242_s27 = sand.u32 (!%p236_p10), 1, %s1356_s9  }
  0x28   : > { %239 = sbr.rel (%p236_p10) target bundleno = 346 (0x15a), region = 47  ;;  %s1252_s28 = sshll.u32 (!%p236_p10), %s242_s27, 8 }
  0x29   : > { %s1513_s29 = scalar_lea.vmem (!%p236_p10), [#allocation3], %s1252_s28  ;;  %s1253_s15 = sshll.u32 (!%p236_p10), %s242_s27, 9 }
  0x2a   : > { %s1675_s16 = scalar_lea.vmem (!%p236_p10), [#allocation4], %s1253_s15 }
  0x2d   : > { %v1374_v32 = vmov 0.0   ;;  %v478_v33 = vld [vmem:[%s1513_s29 + $0xf8] sm:$0xff]  ;;  %v477_v34 = vld [vmem:[%s1513_s29 + $0xf0] sm:$0xff]  ;;  %v476_v35 = vld [vmem:[%s1513_s29 + $0xe8] sm:$0xff]  ;;  %s1260_s9 = sshll.u32 (%p1425_p6), %s1364_s11, 4 }
  0x2e   : > { %543 = vmatprep.mubr.f32.mxu0 %v1374_v32  ;;  %639 = vmatprep.mubr.f32.mxu1 %v1374_v32  ;;  %v475_v36 = vld [vmem:[%s1513_s29 + $0xe0] sm:$0xff]  ;;  %v474_v37 = vld [vmem:[%s1513_s29 + $0xd8] sm:$0xff]  ;;  %v473_v38 = vld [vmem:[%s1513_s29 + $0xd0] sm:$0xff]  ;;  %s1750_s20 = scalar_lea.vmem (%p1425_p6), %s1894_s2, %s1260_s9 }
  0x2f   : > { %479 = vmatprep.subr.mxu0 %v478_v33  ;;  %1261 = vmatprep.subr.mxu1 %v478_v33  ;;  %v472_v39 = vld [vmem:[%s1513_s29 + $0xc8] sm:$0xff]  ;;  %v471_v40 = vld [vmem:[%s1513_s29 + $0xc0] sm:$0xff]  ;;  %v470_v41 = vld [vmem:[%s1513_s29 + $0xb8] sm:$0xff] }
  0x30   : > { %480 = vmatpush1.msra.mxu0 %v477_v34  ;;  %1277 = vmatpush1.msra.mxu1 %v477_v34  ;;  %v469_v42 = vld [vmem:[%s1513_s29 + $0xb0] sm:$0xff]  ;;  %v468_v43 = vld [vmem:[%s1513_s29 + $0xa8] sm:$0xff]  ;;  %v467_v44 = vld [vmem:[%s1513_s29 + $0xa0] sm:$0xff] }
  0x31   : > { %481 = vmatprep.subr.mxu0 %v476_v35  ;;  %1262 = vmatprep.subr.mxu1 %v476_v35  ;;  %v466_v45 = vld [vmem:[%s1513_s29 + $0x98] sm:$0xff]  ;;  %v465_v46 = vld [vmem:[%s1513_s29 + $0x90] sm:$0xff]  ;;  %v464_v47 = vld [vmem:[%s1513_s29 + $0x88] sm:$0xff] }
  0x32   : > { %482 = vmatpush1.msra.mxu0 %v475_v36  ;;  %1278 = vmatpush1.msra.mxu1 %v475_v36  ;;  %v463_v48 = vld [vmem:[%s1513_s29 + $0x80] sm:$0xff]  ;;  %v462_v49 = vld [vmem:[%s1513_s29 + $0x78] sm:$0xff]  ;;  %v461_v50 = vld [vmem:[%s1513_s29 + $0x70] sm:$0xff] }
  0x33   : > { %483 = vmatprep.subr.mxu0 %v474_v37  ;;  %1263 = vmatprep.subr.mxu1 %v474_v37  ;;  %v460_v51 = vld [vmem:[%s1513_s29 + $0x68] sm:$0xff]  ;;  %v459_v52 = vld [vmem:[%s1513_s29 + $0x60] sm:$0xff]  ;;  %v458_v53 = vld [vmem:[%s1513_s29 + $0x58] sm:$0xff] }
  0x34   : > { %484 = vmatpush1.msra.mxu0 %v473_v38  ;;  %1279 = vmatpush1.msra.mxu1 %v473_v38  ;;  %v457_v54 = vld [vmem:[%s1513_s29 + $0x50] sm:$0xff]  ;;  %v456_v55 = vld [vmem:[%s1513_s29 + $0x48] sm:$0xff]  ;;  %v455_v56 = vld [vmem:[%s1513_s29 + $0x40] sm:$0xff] }
  0x35   : > { %485 = vmatprep.subr.mxu0 %v472_v39  ;;  %1264 = vmatprep.subr.mxu1 %v472_v39  ;;  %v454_v57 = vld [vmem:[%s1513_s29 + $0x38] sm:$0xff]  ;;  %v453_v58 = vld [vmem:[%s1513_s29 + $0x30] sm:$0xff]  ;;  %v452_v59 = vld [vmem:[%s1513_s29 + $0x28] sm:$0xff] }
  0x36   : > { %486 = vmatpush1.msra.mxu0 %v471_v40  ;;  %1280 = vmatpush1.msra.mxu1 %v471_v40  ;;  %v451_v60 = vld [vmem:[%s1513_s29 + $0x20] sm:$0xff]  ;;  %v450_v61 = vld [vmem:[%s1513_s29 + $0x18] sm:$0xff]  ;;  %v449_v62 = vld [vmem:[%s1513_s29 + $0x10] sm:$0xff] }
  0x37   : > { %487 = vmatprep.subr.mxu0 %v470_v41  ;;  %1265 = vmatprep.subr.mxu1 %v470_v41  ;;  %v448_v63 = vld [vmem:[%s1513_s29 + $0x8] sm:$0xff]  ;;  %v447_v0 = vld [vmem:[%s1513_s29] sm:$0xff]  ;;  %v417_v5 = vld [vmem:[%s1892_s0 + $0x10] sm:$0xff] }
  0x38   : > { %488 = vmatpush1.msra.mxu0 %v469_v42  ;;  %1281 = vmatpush1.msra.mxu1 %v469_v42  ;;  %v415_v1 = vld [vmem:[%s1892_s0] sm:$0xff]  ;;  %v416_v3 = vld [vmem:[%s1892_s0 + $0x8] sm:$0xff]  ;;  %v433_v6 = vld [vmem:[%s1892_s0 + $0x90] sm:$0xff] }
  0x39   : > { %489 = vmatprep.subr.mxu0 %v468_v43  ;;  %1266 = vmatprep.subr.mxu1 %v468_v43  ;;  %v431_v2 = vld [vmem:[%s1892_s0 + $0x80] sm:$0xff]  ;;  %v432_v4 = vld [vmem:[%s1892_s0 + $0x88] sm:$0xff]  ;;  %v418_v7 = vld [vmem:[%s1892_s0 + $0x18] sm:$0xff] }
  0x3a   : > { %490 = vmatpush1.msra.mxu0 %v467_v44  ;;  %1282 = vmatpush1.msra.mxu1 %v467_v44  ;;  %v434_v8 = vld [vmem:[%s1892_s0 + $0x98] sm:$0xff]  ;;  %v419_v9 = vld [vmem:[%s1892_s0 + $0x20] sm:$0xff]  ;;  %v420_v11 = vld [vmem:[%s1892_s0 + $0x28] sm:$0xff] }
  0x3b   : > { %491 = vmatprep.subr.mxu0 %v466_v45  ;;  %1267 = vmatprep.subr.mxu1 %v466_v45  ;;  %v435_v10 = vld [vmem:[%s1892_s0 + $0xa0] sm:$0xff]  ;;  %v436_v12 = vld [vmem:[%s1892_s0 + $0xa8] sm:$0xff]  ;;  %v421_v13 = vld [vmem:[%s1892_s0 + $0x30] sm:$0xff] }
  0x3c   : > { %492 = vmatpush1.msra.mxu0 %v465_v46  ;;  %1283 = vmatpush1.msra.mxu1 %v465_v46  ;;  %v437_v14 = vld [vmem:[%s1892_s0 + $0xb0] sm:$0xff]  ;;  %v422_v15 = vld [vmem:[%s1892_s0 + $0x38] sm:$0xff]  ;;  %v423_v17 = vld [vmem:[%s1892_s0 + $0x40] sm:$0xff] }
  0x3d   : > { %493 = vmatprep.subr.mxu0 %v464_v47  ;;  %1268 = vmatprep.subr.mxu1 %v464_v47  ;;  %v438_v16 = vld [vmem:[%s1892_s0 + $0xb8] sm:$0xff]  ;;  %v439_v18 = vld [vmem:[%s1892_s0 + $0xc0] sm:$0xff]  ;;  %v424_v19 = vld [vmem:[%s1892_s0 + $0x48] sm:$0xff] }
  0x3e   : > { %494 = vmatpush1.msra.mxu0 %v463_v48  ;;  %1284 = vmatpush1.msra.mxu1 %v463_v48  ;;  %v440_v20 = vld [vmem:[%s1892_s0 + $0xc8] sm:$0xff]  ;;  %v425_v21 = vld [vmem:[%s1892_s0 + $0x50] sm:$0xff]  ;;  %v426_v23 = vld [vmem:[%s1892_s0 + $0x58] sm:$0xff] }
  0x3f   : > { %495 = vmatprep.subr.mxu0 %v462_v49  ;;  %1269 = vmatprep.subr.mxu1 %v462_v49  ;;  %v441_v22 = vld [vmem:[%s1892_s0 + $0xd0] sm:$0xff]  ;;  %v442_v24 = vld [vmem:[%s1892_s0 + $0xd8] sm:$0xff]  ;;  %v427_v25 = vld [vmem:[%s1892_s0 + $0x60] sm:$0xff] }
  0x40   : > { %496 = vmatpush1.msra.mxu0 %v461_v50  ;;  %1285 = vmatpush1.msra.mxu1 %v461_v50  ;;  %v443_v26 = vld [vmem:[%s1892_s0 + $0xe0] sm:$0xff]  ;;  %v428_v27 = vld [vmem:[%s1892_s0 + $0x68] sm:$0xff]  ;;  %v429_v29 = vld [vmem:[%s1892_s0 + $0x70] sm:$0xff] }
  0x41   : > { %497 = vmatprep.subr.mxu0 %v460_v51  ;;  %1270 = vmatprep.subr.mxu1 %v460_v51  ;;  %v444_v28 = vld [vmem:[%s1892_s0 + $0xe8] sm:$0xff]  ;;  %v445_v30 = vld [vmem:[%s1892_s0 + $0xf0] sm:$0xff]  ;;  %v430_v31 = vld [vmem:[%s1892_s0 + $0x78] sm:$0xff] }
  0x42   : > { %498 = vmatpush1.msra.mxu0 %v459_v52  ;;  %1286 = vmatpush1.msra.mxu1 %v459_v52  ;;  %v446_v33 = vld [vmem:[%s1892_s0 + $0xf8] sm:$0xff] }
  0x43   : > { %499 = vmatprep.subr.mxu0 %v458_v53  ;;  %1271 = vmatprep.subr.mxu1 %v458_v53 }
  0x44   : > { %500 = vmatpush1.msra.mxu0 %v457_v54  ;;  %1287 = vmatpush1.msra.mxu1 %v457_v54 }
  0x45   : > { %501 = vmatprep.subr.mxu0 %v456_v55  ;;  %1272 = vmatprep.subr.mxu1 %v456_v55 }
  0x46   : > { %502 = vmatpush1.msra.mxu0 %v455_v56  ;;  %1288 = vmatpush1.msra.mxu1 %v455_v56 }
  0x47   : > { %503 = vmatprep.subr.mxu0 %v454_v57  ;;  %1273 = vmatprep.subr.mxu1 %v454_v57 }
  0x48   : > { %504 = vmatpush1.msra.mxu0 %v453_v58  ;;  %1289 = vmatpush1.msra.mxu1 %v453_v58 }
  0x49   : > { %505 = vmatprep.subr.mxu0 %v452_v59  ;;  %1274 = vmatprep.subr.mxu1 %v452_v59 }
  0x4a   : > { %506 = vmatpush1.msra.mxu0 %v451_v60  ;;  %1290 = vmatpush1.msra.mxu1 %v451_v60 }
  0x4b   : > { %507 = vmatprep.subr.mxu0 %v450_v61  ;;  %1275 = vmatprep.subr.mxu1 %v450_v61 }
  0x4c   : > { %508 = vmatpush1.msra.mxu0 %v449_v62  ;;  %1291 = vmatpush1.msra.mxu1 %v449_v62 }
  0x4d   : > { %509 = vmatprep.subr.mxu0 %v448_v63  ;;  %1276 = vmatprep.subr.mxu1 %v448_v63 }
  0x4e   : > { %510 = vmatpush1.msra.mxu0 %v447_v0  ;;  %1292 = vmatpush1.msra.mxu1 %v447_v0 }
  0x4f   : > { %544 = vmatmul.mubr.f32.vlgmr.msra.gmra.mxu0 %v415_v1  ;;  %640 = vmatmul.mubr.f32.vlgmr.msra.gmra.mxu1 %v431_v2 }
  0x50   : > { %549 = vmatprep.mubr.f32.mxu0 %v1374_v32  ;;  %645 = vmatprep.mubr.f32.mxu1 %v1374_v32 }
  0x53   : > { %550 = vmatmul.mubr.f32.gmra.mxu0 %v416_v3  ;;  %646 = vmatmul.mubr.f32.gmra.mxu1 %v432_v4 }
  0x54   : > { %555 = vmatprep.mubr.f32.mxu0 %v1374_v32  ;;  %651 = vmatprep.mubr.f32.mxu1 %v1374_v32 }
  0x57   : > { %556 = vmatmul.mubr.f32.gmra.mxu0 %v417_v5  ;;  %652 = vmatmul.mubr.f32.gmra.mxu1 %v433_v6 }
  0x58   : > { %561 = vmatprep.mubr.f32.mxu0 %v1374_v32  ;;  %657 = vmatprep.mubr.f32.mxu1 %v1374_v32 }
  0x5b   : > { %562 = vmatmul.mubr.f32.gmra.mxu0 %v418_v7  ;;  %658 = vmatmul.mubr.f32.gmra.mxu1 %v434_v8 }
  0x5c   : > { %567 = vmatprep.mubr.f32.mxu0 %v1374_v32  ;;  %663 = vmatprep.mubr.f32.mxu1 %v1374_v32 }
  0x5f   : > { %568 = vmatmul.mubr.f32.gmra.mxu0 %v419_v9  ;;  %664 = vmatmul.mubr.f32.gmra.mxu1 %v435_v10 }
  0x60   : > { %573 = vmatprep.mubr.f32.mxu0 %v1374_v32  ;;  %669 = vmatprep.mubr.f32.mxu1 %v1374_v32 }
  0x63   : > { %574 = vmatmul.mubr.f32.gmra.mxu0 %v420_v11  ;;  %670 = vmatmul.mubr.f32.gmra.mxu1 %v436_v12 }
  0x64   : > { %579 = vmatprep.mubr.f32.mxu0 %v1374_v32  ;;  %675 = vmatprep.mubr.f32.mxu1 %v1374_v32 }
  0x67   : > { %580 = vmatmul.mubr.f32.gmra.mxu0 %v421_v13  ;;  %676 = vmatmul.mubr.f32.gmra.mxu1 %v437_v14 }
  0x68   : > { %585 = vmatprep.mubr.f32.mxu0 %v1374_v32  ;;  %681 = vmatprep.mubr.f32.mxu1 %v1374_v32 }
  0x6b   : > { %586 = vmatmul.mubr.f32.gmra.mxu0 %v422_v15  ;;  %682 = vmatmul.mubr.f32.gmra.mxu1 %v438_v16 }
  0x6c   : > { %591 = vmatprep.mubr.f32.mxu0 %v1374_v32  ;;  %687 = vmatprep.mubr.f32.mxu1 %v1374_v32 }
  0x6f   : > { %592 = vmatmul.mubr.f32.gmra.mxu0 %v423_v17  ;;  %688 = vmatmul.mubr.f32.gmra.mxu1 %v439_v18 }
  0x70   : > { %597 = vmatprep.mubr.f32.mxu0 %v1374_v32  ;;  %693 = vmatprep.mubr.f32.mxu1 %v1374_v32 }
  0x73   : > { %598 = vmatmul.mubr.f32.gmra.mxu0 %v424_v19  ;;  %694 = vmatmul.mubr.f32.gmra.mxu1 %v440_v20 }
  0x74   : > { %603 = vmatprep.mubr.f32.mxu0 %v1374_v32  ;;  %699 = vmatprep.mubr.f32.mxu1 %v1374_v32 }
  0x77   : > { %604 = vmatmul.mubr.f32.gmra.mxu0 %v425_v21  ;;  %700 = vmatmul.mubr.f32.gmra.mxu1 %v441_v22 }
  0x78   : > { %609 = vmatprep.mubr.f32.mxu0 %v1374_v32  ;;  %705 = vmatprep.mubr.f32.mxu1 %v1374_v32 }
  0x7b   : > { %610 = vmatmul.mubr.f32.gmra.mxu0 %v426_v23  ;;  %706 = vmatmul.mubr.f32.gmra.mxu1 %v442_v24 }
  0x7c   : > { %615 = vmatprep.mubr.f32.mxu0 %v1374_v32  ;;  %711 = vmatprep.mubr.f32.mxu1 %v1374_v32 }
  0x7f   : > { %616 = vmatmul.mubr.f32.gmra.mxu0 %v427_v25  ;;  %712 = vmatmul.mubr.f32.gmra.mxu1 %v443_v26 }
  0x80   : > { %621 = vmatprep.mubr.f32.mxu0 %v1374_v32  ;;  %717 = vmatprep.mubr.f32.mxu1 %v1374_v32 }
  0x83   : > { %622 = vmatmul.mubr.f32.gmra.mxu0 %v428_v27  ;;  %718 = vmatmul.mubr.f32.gmra.mxu1 %v444_v28 }
  0x84   : > { %627 = vmatprep.mubr.f32.mxu0 %v1374_v32  ;;  %723 = vmatprep.mubr.f32.mxu1 %v1374_v32 }
  0x87   : > { %628 = vmatmul.mubr.f32.gmra.mxu0 %v429_v29  ;;  %724 = vmatmul.mubr.f32.gmra.mxu1 %v445_v30 }
  0x88   : > { %633 = vmatprep.mubr.f32.mxu0 %v1374_v32  ;;  %729 = vmatprep.mubr.f32.mxu1 %v1374_v32 }
  0x8b   : > { %634 = vmatmul.mubr.f32.gmra.mxu0 %v430_v31  ;;  %730 = vmatmul.mubr.f32.gmra.mxu1 %v446_v33 }
 0x10f   : > { %v545_v34 = vpop.f32.mrf.mxu0  ;;  %v641_v35 = vpop.f32.mrf.mxu1 }
 0x110   : > { %931 = vst [vmem:[%s1675_s16] sm:$0xff] %v545_v34  ;;  %963 = vst [vmem:[%s1675_s16 + $0x100] sm:$0xff] %v641_v35 }
 0x111   : > { %v547_v32 = vpop.f32.mrf.mxu0  ;;  %v643_v36 = vpop.f32.mrf.mxu1 }
 0x112   : > { %932 = vst [vmem:[%s1675_s16 + $0x8] sm:$0xff] %v547_v32  ;;  %964 = vst [vmem:[%s1675_s16 + $0x108] sm:$0xff] %v643_v36 }
 0x113   : > { %v551_v37 = vpop.f32.mrf.mxu0  ;;  %v647_v38 = vpop.f32.mrf.mxu1 }
 0x114   : > { %933 = vst [vmem:[%s1675_s16 + $0x10] sm:$0xff] %v551_v37  ;;  %965 = vst [vmem:[%s1675_s16 + $0x110] sm:$0xff] %v647_v38 }
 0x115   : > { %v553_v39 = vpop.f32.mrf.mxu0  ;;  %v649_v40 = vpop.f32.mrf.mxu1 }
 0x116   : > { %934 = vst [vmem:[%s1675_s16 + $0x18] sm:$0xff] %v553_v39  ;;  %966 = vst [vmem:[%s1675_s16 + $0x118] sm:$0xff] %v649_v40 }
 0x117   : > { %v557_v41 = vpop.f32.mrf.mxu0  ;;  %v653_v42 = vpop.f32.mrf.mxu1  ;;  %v1020_v34 = vld [vmem:[%s1675_s16] sm:$0xff] (%p1425_p6) }
 0x118   : > { %935 = vst [vmem:[%s1675_s16 + $0x20] sm:$0xff] %v557_v41  ;;  %967 = vst [vmem:[%s1675_s16 + $0x120] sm:$0xff] %v653_v42 }
 0x119   : > { %v559_v43 = vpop.f32.mrf.mxu0  ;;  %v655_v44 = vpop.f32.mrf.mxu1  ;;  %v1022_v35 = vld [vmem:[%s1675_s16 + $0x8] sm:$0xff] (%p1425_p6)  ;;  %1021 = vst [vmem:[%s1750_s20] sm:$0xff] (%p1425_p6), %v1020_v34 }
 0x11a   : > { %936 = vst [vmem:[%s1675_s16 + $0x28] sm:$0xff] %v559_v43  ;;  %968 = vst [vmem:[%s1675_s16 + $0x128] sm:$0xff] %v655_v44 }
 0x11b   : > { %v563_v45 = vpop.f32.mrf.mxu0  ;;  %v659_v46 = vpop.f32.mrf.mxu1  ;;  %v1024_v32 = vld [vmem:[%s1675_s16 + $0x10] sm:$0xff] (%p1425_p6)  ;;  %1023 = vst [vmem:[%s1750_s20 + $0x8] sm:$0xff] (%p1425_p6), %v1022_v35 }
 0x11c   : > { %937 = vst [vmem:[%s1675_s16 + $0x30] sm:$0xff] %v563_v45  ;;  %969 = vst [vmem:[%s1675_s16 + $0x130] sm:$0xff] %v659_v46 }
 0x11d   : > { %v565_v47 = vpop.f32.mrf.mxu0  ;;  %v661_v48 = vpop.f32.mrf.mxu1  ;;  %v1026_v36 = vld [vmem:[%s1675_s16 + $0x18] sm:$0xff] (%p1425_p6)  ;;  %1025 = vst [vmem:[%s1750_s20 + $0x20] sm:$0xff] (%p1425_p6), %v1024_v32 }
 0x11e   : > { %938 = vst [vmem:[%s1675_s16 + $0x38] sm:$0xff] %v565_v47  ;;  %970 = vst [vmem:[%s1675_s16 + $0x138] sm:$0xff] %v661_v48 }
 0x11f   : > { %v569_v49 = vpop.f32.mrf.mxu0  ;;  %v665_v50 = vpop.f32.mrf.mxu1  ;;  %v1028_v37 = vld [vmem:[%s1675_s16 + $0x20] sm:$0xff] (%p1425_p6)  ;;  %1027 = vst [vmem:[%s1750_s20 + $0x28] sm:$0xff] (%p1425_p6), %v1026_v36 }
 0x120   : > { %939 = vst [vmem:[%s1675_s16 + $0x40] sm:$0xff] %v569_v49  ;;  %971 = vst [vmem:[%s1675_s16 + $0x140] sm:$0xff] %v665_v50 }
 0x121   : > { %v571_v51 = vpop.f32.mrf.mxu0  ;;  %v667_v52 = vpop.f32.mrf.mxu1  ;;  %v1030_v38 = vld [vmem:[%s1675_s16 + $0x28] sm:$0xff] (%p1425_p6)  ;;  %1029 = vst [vmem:[%s1750_s20 + $0x40] sm:$0xff] (%p1425_p6), %v1028_v37 }
 0x122   : > { %940 = vst [vmem:[%s1675_s16 + $0x48] sm:$0xff] %v571_v51  ;;  %972 = vst [vmem:[%s1675_s16 + $0x148] sm:$0xff] %v667_v52 }
 0x123   : > { %v575_v53 = vpop.f32.mrf.mxu0  ;;  %v671_v54 = vpop.f32.mrf.mxu1  ;;  %1031 = vst [vmem:[%s1750_s20 + $0x48] sm:$0xff] (%p1425_p6), %v1030_v38  ;;  %v1032_v39 = vld [vmem:[%s1675_s16 + $0x30] sm:$0xff] (%p1425_p6) }
 0x124   : > { %941 = vst [vmem:[%s1675_s16 + $0x50] sm:$0xff] %v575_v53  ;;  %973 = vst [vmem:[%s1675_s16 + $0x150] sm:$0xff] %v671_v54 }
 0x125   : > { %v577_v55 = vpop.f32.mrf.mxu0  ;;  %v673_v56 = vpop.f32.mrf.mxu1  ;;  %v1034_v40 = vld [vmem:[%s1675_s16 + $0x38] sm:$0xff] (%p1425_p6)  ;;  %1033 = vst [vmem:[%s1750_s20 + $0x60] sm:$0xff] (%p1425_p6), %v1032_v39 }
 0x126   : > { %942 = vst [vmem:[%s1675_s16 + $0x58] sm:$0xff] %v577_v55  ;;  %974 = vst [vmem:[%s1675_s16 + $0x158] sm:$0xff] %v673_v56 }
 0x127   : > { %v581_v57 = vpop.f32.mrf.mxu0  ;;  %v677_v58 = vpop.f32.mrf.mxu1  ;;  %v1036_v41 = vld [vmem:[%s1675_s16 + $0x40] sm:$0xff] (%p1425_p6)  ;;  %1035 = vst [vmem:[%s1750_s20 + $0x68] sm:$0xff] (%p1425_p6), %v1034_v40 }
 0x128   : > { %943 = vst [vmem:[%s1675_s16 + $0x60] sm:$0xff] %v581_v57  ;;  %975 = vst [vmem:[%s1675_s16 + $0x160] sm:$0xff] %v677_v58 }
 0x129   : > { %v583_v59 = vpop.f32.mrf.mxu0  ;;  %v679_v60 = vpop.f32.mrf.mxu1  ;;  %1037 = vst [vmem:[%s1750_s20 + $0x80] sm:$0xff] (%p1425_p6), %v1036_v41  ;;  %v1038_v42 = vld [vmem:[%s1675_s16 + $0x48] sm:$0xff] (%p1425_p6) }
 0x12a   : > { %944 = vst [vmem:[%s1675_s16 + $0x68] sm:$0xff] %v583_v59  ;;  %976 = vst [vmem:[%s1675_s16 + $0x168] sm:$0xff] %v679_v60 }
 0x12b   : > { %v587_v61 = vpop.f32.mrf.mxu0  ;;  %v683_v62 = vpop.f32.mrf.mxu1  ;;  %v1040_v43 = vld [vmem:[%s1675_s16 + $0x50] sm:$0xff] (%p1425_p6)  ;;  %1039 = vst [vmem:[%s1750_s20 + $0x88] sm:$0xff] (%p1425_p6), %v1038_v42 }
 0x12c   : > { %945 = vst [vmem:[%s1675_s16 + $0x70] sm:$0xff] %v587_v61  ;;  %977 = vst [vmem:[%s1675_s16 + $0x170] sm:$0xff] %v683_v62 }
 0x12d   : > { %v589_v63 = vpop.f32.mrf.mxu0  ;;  %v685_v0 = vpop.f32.mrf.mxu1  ;;  %v1042_v44 = vld [vmem:[%s1675_s16 + $0x58] sm:$0xff] (%p1425_p6)  ;;  %1041 = vst [vmem:[%s1750_s20 + $0xa0] sm:$0xff] (%p1425_p6), %v1040_v43 }
 0x12e   : > { %946 = vst [vmem:[%s1675_s16 + $0x78] sm:$0xff] %v589_v63  ;;  %978 = vst [vmem:[%s1675_s16 + $0x178] sm:$0xff] %v685_v0 }
 0x12f   : > { %v593_v1 = vpop.f32.mrf.mxu0  ;;  %v689_v2 = vpop.f32.mrf.mxu1  ;;  %1043 = vst [vmem:[%s1750_s20 + $0xa8] sm:$0xff] (%p1425_p6), %v1042_v44  ;;  %v1044_v45 = vld [vmem:[%s1675_s16 + $0x60] sm:$0xff] (%p1425_p6) }
 0x130   : > { %947 = vst [vmem:[%s1675_s16 + $0x80] sm:$0xff] %v593_v1  ;;  %979 = vst [vmem:[%s1675_s16 + $0x180] sm:$0xff] %v689_v2  ;;  %v1084_v1 = vld [vmem:[%s1675_s16 + $0x100] sm:$0xff] (%p1425_p6)  ;;  %v1086_v2 = vld [vmem:[%s1675_s16 + $0x108] sm:$0xff] (%p1425_p6) }
 0x131   : > { %v595_v3 = vpop.f32.mrf.mxu0  ;;  %v691_v4 = vpop.f32.mrf.mxu1  ;;  %v1046_v46 = vld [vmem:[%s1675_s16 + $0x68] sm:$0xff] (%p1425_p6)  ;;  %1045 = vst [vmem:[%s1750_s20 + $0xc0] sm:$0xff] (%p1425_p6), %v1044_v45  ;;  %1085 = vst [vmem:[%s1750_s20 + $0x200] sm:$0xff] (%p1425_p6), %v1084_v1 }
 0x132   : > { %948 = vst [vmem:[%s1675_s16 + $0x88] sm:$0xff] %v595_v3  ;;  %980 = vst [vmem:[%s1675_s16 + $0x188] sm:$0xff] %v691_v4  ;;  %v1088_v3 = vld [vmem:[%s1675_s16 + $0x110] sm:$0xff] (%p1425_p6)  ;;  %v1090_v4 = vld [vmem:[%s1675_s16 + $0x118] sm:$0xff] (%p1425_p6) }
 0x133   : > { %v599_v5 = vpop.f32.mrf.mxu0  ;;  %v695_v6 = vpop.f32.mrf.mxu1  ;;  %v1048_v47 = vld [vmem:[%s1675_s16 + $0x70] sm:$0xff] (%p1425_p6)  ;;  %1047 = vst [vmem:[%s1750_s20 + $0xc8] sm:$0xff] (%p1425_p6), %v1046_v46  ;;  %1087 = vst [vmem:[%s1750_s20 + $0x208] sm:$0xff] (%p1425_p6), %v1086_v2 }
 0x134   : > { %949 = vst [vmem:[%s1675_s16 + $0x90] sm:$0xff] %v599_v5  ;;  %981 = vst [vmem:[%s1675_s16 + $0x190] sm:$0xff] %v695_v6  ;;  %v1092_v5 = vld [vmem:[%s1675_s16 + $0x120] sm:$0xff] (%p1425_p6)  ;;  %v1094_v6 = vld [vmem:[%s1675_s16 + $0x128] sm:$0xff] (%p1425_p6) }
 0x135   : > { %v601_v7 = vpop.f32.mrf.mxu0  ;;  %v697_v8 = vpop.f32.mrf.mxu1  ;;  %1049 = vst [vmem:[%s1750_s20 + $0xe0] sm:$0xff] (%p1425_p6), %v1048_v47  ;;  %v1050_v48 = vld [vmem:[%s1675_s16 + $0x78] sm:$0xff] (%p1425_p6)  ;;  %1089 = vst [vmem:[%s1750_s20 + $0x220] sm:$0xff] (%p1425_p6), %v1088_v3 }
 0x136   : > { %950 = vst [vmem:[%s1675_s16 + $0x98] sm:$0xff] %v601_v7  ;;  %982 = vst [vmem:[%s1675_s16 + $0x198] sm:$0xff] %v697_v8  ;;  %v1096_v7 = vld [vmem:[%s1675_s16 + $0x130] sm:$0xff] (%p1425_p6)  ;;  %v1098_v8 = vld [vmem:[%s1675_s16 + $0x138] sm:$0xff] (%p1425_p6) }
 0x137   : > { %v605_v9 = vpop.f32.mrf.mxu0  ;;  %v701_v10 = vpop.f32.mrf.mxu1  ;;  %v1052_v49 = vld [vmem:[%s1675_s16 + $0x80] sm:$0xff] (%p1425_p6)  ;;  %1051 = vst [vmem:[%s1750_s20 + $0xe8] sm:$0xff] (%p1425_p6), %v1050_v48  ;;  %1091 = vst [vmem:[%s1750_s20 + $0x228] sm:$0xff] (%p1425_p6), %v1090_v4 }
 0x138   : > { %951 = vst [vmem:[%s1675_s16 + $0xa0] sm:$0xff] %v605_v9  ;;  %983 = vst [vmem:[%s1675_s16 + $0x1a0] sm:$0xff] %v701_v10  ;;  %v1100_v9 = vld [vmem:[%s1675_s16 + $0x140] sm:$0xff] (%p1425_p6)  ;;  %v1102_v10 = vld [vmem:[%s1675_s16 + $0x148] sm:$0xff] (%p1425_p6) }
 0x139   : > { %v607_v11 = vpop.f32.mrf.mxu0  ;;  %v703_v12 = vpop.f32.mrf.mxu1  ;;  %v1054_v50 = vld [vmem:[%s1675_s16 + $0x88] sm:$0xff] (%p1425_p6)  ;;  %1053 = vst [vmem:[%s1750_s20 + $0x100] sm:$0xff] (%p1425_p6), %v1052_v49  ;;  %1093 = vst [vmem:[%s1750_s20 + $0x240] sm:$0xff] (%p1425_p6), %v1092_v5 }
 0x13a   : > { %952 = vst [vmem:[%s1675_s16 + $0xa8] sm:$0xff] %v607_v11  ;;  %984 = vst [vmem:[%s1675_s16 + $0x1a8] sm:$0xff] %v703_v12  ;;  %v1104_v11 = vld [vmem:[%s1675_s16 + $0x150] sm:$0xff] (%p1425_p6)  ;;  %v1106_v12 = vld [vmem:[%s1675_s16 + $0x158] sm:$0xff] (%p1425_p6) }
 0x13b   : > { %v611_v13 = vpop.f32.mrf.mxu0  ;;  %v707_v14 = vpop.f32.mrf.mxu1  ;;  %1055 = vst [vmem:[%s1750_s20 + $0x108] sm:$0xff] (%p1425_p6), %v1054_v50  ;;  %v1056_v51 = vld [vmem:[%s1675_s16 + $0x90] sm:$0xff] (%p1425_p6)  ;;  %1095 = vst [vmem:[%s1750_s20 + $0x248] sm:$0xff] (%p1425_p6), %v1094_v6 }
 0x13c   : > { %953 = vst [vmem:[%s1675_s16 + $0xb0] sm:$0xff] %v611_v13  ;;  %985 = vst [vmem:[%s1675_s16 + $0x1b0] sm:$0xff] %v707_v14  ;;  %v1108_v13 = vld [vmem:[%s1675_s16 + $0x160] sm:$0xff] (%p1425_p6)  ;;  %v1110_v14 = vld [vmem:[%s1675_s16 + $0x168] sm:$0xff] (%p1425_p6) }
 0x13d   : > { %v613_v15 = vpop.f32.mrf.mxu0  ;;  %v709_v16 = vpop.f32.mrf.mxu1  ;;  %v1058_v52 = vld [vmem:[%s1675_s16 + $0x98] sm:$0xff] (%p1425_p6)  ;;  %1057 = vst [vmem:[%s1750_s20 + $0x120] sm:$0xff] (%p1425_p6), %v1056_v51  ;;  %1097 = vst [vmem:[%s1750_s20 + $0x260] sm:$0xff] (%p1425_p6), %v1096_v7 }
 0x13e   : > { %954 = vst [vmem:[%s1675_s16 + $0xb8] sm:$0xff] %v613_v15  ;;  %986 = vst [vmem:[%s1675_s16 + $0x1b8] sm:$0xff] %v709_v16  ;;  %v1112_v15 = vld [vmem:[%s1675_s16 + $0x170] sm:$0xff] (%p1425_p6)  ;;  %v1114_v16 = vld [vmem:[%s1675_s16 + $0x178] sm:$0xff] (%p1425_p6) }
 0x13f   : > { %v617_v17 = vpop.f32.mrf.mxu0  ;;  %v713_v18 = vpop.f32.mrf.mxu1  ;;  %v1060_v53 = vld [vmem:[%s1675_s16 + $0xa0] sm:$0xff] (%p1425_p6)  ;;  %1059 = vst [vmem:[%s1750_s20 + $0x128] sm:$0xff] (%p1425_p6), %v1058_v52  ;;  %1099 = vst [vmem:[%s1750_s20 + $0x268] sm:$0xff] (%p1425_p6), %v1098_v8 }
 0x140   : > { %955 = vst [vmem:[%s1675_s16 + $0xc0] sm:$0xff] %v617_v17  ;;  %987 = vst [vmem:[%s1675_s16 + $0x1c0] sm:$0xff] %v713_v18  ;;  %v1116_v17 = vld [vmem:[%s1675_s16 + $0x180] sm:$0xff] (%p1425_p6)  ;;  %v1118_v18 = vld [vmem:[%s1675_s16 + $0x188] sm:$0xff] (%p1425_p6) }
 0x141   : > { %v619_v19 = vpop.f32.mrf.mxu0  ;;  %v715_v20 = vpop.f32.mrf.mxu1  ;;  %1061 = vst [vmem:[%s1750_s20 + $0x140] sm:$0xff] (%p1425_p6), %v1060_v53  ;;  %v1062_v54 = vld [vmem:[%s1675_s16 + $0xa8] sm:$0xff] (%p1425_p6)  ;;  %1101 = vst [vmem:[%s1750_s20 + $0x280] sm:$0xff] (%p1425_p6), %v1100_v9 }
 0x142   : > { %956 = vst [vmem:[%s1675_s16 + $0xc8] sm:$0xff] %v619_v19  ;;  %988 = vst [vmem:[%s1675_s16 + $0x1c8] sm:$0xff] %v715_v20  ;;  %v1120_v19 = vld [vmem:[%s1675_s16 + $0x190] sm:$0xff] (%p1425_p6)  ;;  %v1122_v20 = vld [vmem:[%s1675_s16 + $0x198] sm:$0xff] (%p1425_p6) }
 0x143   : > { %v623_v21 = vpop.f32.mrf.mxu0  ;;  %v719_v22 = vpop.f32.mrf.mxu1  ;;  %v1064_v55 = vld [vmem:[%s1675_s16 + $0xb0] sm:$0xff] (%p1425_p6)  ;;  %1063 = vst [vmem:[%s1750_s20 + $0x148] sm:$0xff] (%p1425_p6), %v1062_v54  ;;  %1103 = vst [vmem:[%s1750_s20 + $0x288] sm:$0xff] (%p1425_p6), %v1102_v10 }
 0x144   : > { %957 = vst [vmem:[%s1675_s16 + $0xd0] sm:$0xff] %v623_v21  ;;  %989 = vst [vmem:[%s1675_s16 + $0x1d0] sm:$0xff] %v719_v22  ;;  %v1124_v21 = vld [vmem:[%s1675_s16 + $0x1a0] sm:$0xff] (%p1425_p6)  ;;  %v1126_v22 = vld [vmem:[%s1675_s16 + $0x1a8] sm:$0xff] (%p1425_p6) }
 0x145   : > { %v625_v23 = vpop.f32.mrf.mxu0  ;;  %v721_v24 = vpop.f32.mrf.mxu1  ;;  %v1066_v56 = vld [vmem:[%s1675_s16 + $0xb8] sm:$0xff] (%p1425_p6)  ;;  %1065 = vst [vmem:[%s1750_s20 + $0x160] sm:$0xff] (%p1425_p6), %v1064_v55  ;;  %1105 = vst [vmem:[%s1750_s20 + $0x2a0] sm:$0xff] (%p1425_p6), %v1104_v11 }
 0x146   : > { %958 = vst [vmem:[%s1675_s16 + $0xd8] sm:$0xff] %v625_v23  ;;  %990 = vst [vmem:[%s1675_s16 + $0x1d8] sm:$0xff] %v721_v24  ;;  %v1128_v23 = vld [vmem:[%s1675_s16 + $0x1b0] sm:$0xff] (%p1425_p6)  ;;  %v1130_v24 = vld [vmem:[%s1675_s16 + $0x1b8] sm:$0xff] (%p1425_p6) }
 0x147   : > { %v629_v25 = vpop.f32.mrf.mxu0  ;;  %v725_v26 = vpop.f32.mrf.mxu1  ;;  %1067 = vst [vmem:[%s1750_s20 + $0x168] sm:$0xff] (%p1425_p6), %v1066_v56  ;;  %v1068_v57 = vld [vmem:[%s1675_s16 + $0xc0] sm:$0xff] (%p1425_p6)  ;;  %1107 = vst [vmem:[%s1750_s20 + $0x2a8] sm:$0xff] (%p1425_p6), %v1106_v12 }
 0x148   : > { %959 = vst [vmem:[%s1675_s16 + $0xe0] sm:$0xff] %v629_v25  ;;  %991 = vst [vmem:[%s1675_s16 + $0x1e0] sm:$0xff] %v725_v26  ;;  %v1132_v25 = vld [vmem:[%s1675_s16 + $0x1c0] sm:$0xff] (%p1425_p6) }
 0x149   : > { %v631_v27 = vpop.f32.mrf.mxu0  ;;  %v727_v28 = vpop.f32.mrf.mxu1  ;;  %v1070_v58 = vld [vmem:[%s1675_s16 + $0xc8] sm:$0xff] (%p1425_p6)  ;;  %1069 = vst [vmem:[%s1750_s20 + $0x180] sm:$0xff] (%p1425_p6), %v1068_v57  ;;  %1109 = vst [vmem:[%s1750_s20 + $0x2c0] sm:$0xff] (%p1425_p6), %v1108_v13 }
 0x14a   : > { %960 = vst [vmem:[%s1675_s16 + $0xe8] sm:$0xff] %v631_v27  ;;  %992 = vst [vmem:[%s1675_s16 + $0x1e8] sm:$0xff] %v727_v28  ;;  %1001 = sbr.rel (!%p1425_p6) target bundleno = 346 (0x15a), region = 63  ;;  %v1134_v26 = vld [vmem:[%s1675_s16 + $0x1c8] sm:$0xff] (%p1425_p6) }
 0x14b   : > { %v635_v29 = vpop.f32.mrf.mxu0  ;;  %v731_v30 = vpop.f32.mrf.mxu1  ;;  %v1072_v59 = vld [vmem:[%s1675_s16 + $0xd0] sm:$0xff] (%p1425_p6)  ;;  %1071 = vst [vmem:[%s1750_s20 + $0x188] sm:$0xff] (%p1425_p6), %v1070_v58  ;;  %1111 = vst [vmem:[%s1750_s20 + $0x2c8] sm:$0xff] (%p1425_p6), %v1110_v14 }
 0x14c   : > { %961 = vst [vmem:[%s1675_s16 + $0xf0] sm:$0xff] %v635_v29  ;;  %993 = vst [vmem:[%s1675_s16 + $0x1f0] sm:$0xff] %v731_v30  ;;  %v1136_v27 = vld [vmem:[%s1675_s16 + $0x1d0] sm:$0xff] (%p1425_p6) }
 0x14d   : > { %v637_v31 = vpop.f32.mrf.mxu0  ;;  %v733_v33 = vpop.f32.mrf.mxu1  ;;  %1073 = vst [vmem:[%s1750_s20 + $0x1a0] sm:$0xff] (%p1425_p6), %v1072_v59  ;;  %v1074_v60 = vld [vmem:[%s1675_s16 + $0xd8] sm:$0xff] (%p1425_p6)  ;;  %1113 = vst [vmem:[%s1750_s20 + $0x2e0] sm:$0xff] (%p1425_p6), %v1112_v15 }
 0x14e   : > { %962 = vst [vmem:[%s1675_s16 + $0xf8] sm:$0xff] %v637_v31  ;;  %994 = vst [vmem:[%s1675_s16 + $0x1f8] sm:$0xff] %v733_v33  ;;  %v1138_v28 = vld [vmem:[%s1675_s16 + $0x1d8] sm:$0xff] (%p1425_p6) }
 0x14f   : > { %v1076_v61 = vld [vmem:[%s1675_s16 + $0xe0] sm:$0xff]  ;;  %1075 = vst [vmem:[%s1750_s20 + $0x1a8] sm:$0xff] %v1074_v60  ;;  %1115 = vst [vmem:[%s1750_s20 + $0x2e8] sm:$0xff] %v1114_v16 }
 0x150   : > { %1077 = vst [vmem:[%s1750_s20 + $0x1c0] sm:$0xff] %v1076_v61  ;;  %1117 = vst [vmem:[%s1750_s20 + $0x300] sm:$0xff] %v1116_v17  ;;  %v1140_v29 = vld [vmem:[%s1675_s16 + $0x1e0] sm:$0xff] }
 0x151   : > { %v1078_v62 = vld [vmem:[%s1675_s16 + $0xe8] sm:$0xff]  ;;  %1119 = vst [vmem:[%s1750_s20 + $0x308] sm:$0xff] %v1118_v18  ;;  %1121 = vst [vmem:[%s1750_s20 + $0x320] sm:$0xff] %v1120_v19 }
 0x152   : > { %1079 = vst [vmem:[%s1750_s20 + $0x1c8] sm:$0xff] %v1078_v62  ;;  %1123 = vst [vmem:[%s1750_s20 + $0x328] sm:$0xff] %v1122_v20  ;;  %v1142_v30 = vld [vmem:[%s1675_s16 + $0x1e8] sm:$0xff] }
 0x153   : > { %v1080_v63 = vld [vmem:[%s1675_s16 + $0xf0] sm:$0xff]  ;;  %1125 = vst [vmem:[%s1750_s20 + $0x340] sm:$0xff] %v1124_v21  ;;  %1127 = vst [vmem:[%s1750_s20 + $0x348] sm:$0xff] %v1126_v22 }
 0x154   : > { %1081 = vst [vmem:[%s1750_s20 + $0x1e0] sm:$0xff] %v1080_v63  ;;  %1129 = vst [vmem:[%s1750_s20 + $0x360] sm:$0xff] %v1128_v23  ;;  %v1144_v31 = vld [vmem:[%s1675_s16 + $0x1f0] sm:$0xff] }
 0x155   : > { %v1082_v0 = vld [vmem:[%s1675_s16 + $0xf8] sm:$0xff]  ;;  %1131 = vst [vmem:[%s1750_s20 + $0x368] sm:$0xff] %v1130_v24  ;;  %1133 = vst [vmem:[%s1750_s20 + $0x380] sm:$0xff] %v1132_v25 }
 0x156   : > { %1083 = vst [vmem:[%s1750_s20 + $0x1e8] sm:$0xff] %v1082_v0  ;;  %1135 = vst [vmem:[%s1750_s20 + $0x388] sm:$0xff] %v1134_v26  ;;  %v1146_v33 = vld [vmem:[%s1675_s16 + $0x1f8] sm:$0xff] }
 0x157   : > { %1137 = vst [vmem:[%s1750_s20 + $0x3a0] sm:$0xff] %v1136_v27  ;;  %1139 = vst [vmem:[%s1750_s20 + $0x3a8] sm:$0xff] %v1138_v28 }
 0x158   : > { %1141 = vst [vmem:[%s1750_s20 + $0x3c0] sm:$0xff] %v1140_v29  ;;  %1143 = vst [vmem:[%s1750_s20 + $0x3c8] sm:$0xff] %v1142_v30 }
 0x159   : > { %1145 = vst [vmem:[%s1750_s20 + $0x3e0] sm:$0xff] %v1144_v31  ;;  %1147 = vst [vmem:[%s1750_s20 + $0x3e8] sm:$0xff] %v1146_v33 }
 0x15a PF: > { %s12_s13 = sadd.s32 1, %s1372_s13   ;;  %s1896_s9 = smov %s1360_s10 }
 0x15b   : > { %p9_p11 = scmp.ge.s32.totalorder %s12_s13, 4   ;;  %s1897_s10 = smov %s1430_s19 }
 0x15c   : > { %s1898_s11 = smov %s1368_s12  ;;  %s1899_s12 = smov %s1901_s14 }
 0x15d   :  { %11 = sbr.rel (!%p9_p11) target bundleno = 3 (0x3), region = 120 }

</bundles_post_ra>
